<compile_context>
chip_gen: v5e
topology: v5e:2x2
jax: 0.10.0
libtpu: 0.0.40
codegen_flags: <defaults>
</compile_context>

<pallas_src>
import functools

import jax
import jax.numpy as jnp
from jax.experimental import pallas as pl
from jax.experimental.pallas import tpu as pltpu


def gem_kernel(p_ref, x_ref, o_ref, *, eps):
    # p_ref: (1, 1) scalar in SMEM, x_ref: (row_tile, HW), o_ref: (row_tile, 1)
    p = p_ref[0, 0]
    inv_p = 1.0 / p                                  # hoisted scalar
    x = jnp.maximum(x_ref[...].astype(jnp.float32), eps)   # clamp(min=eps)
    xp = jnp.exp(p * jnp.log(x))                     # x ** p  (x > 0 after clamp)
    m = jnp.mean(xp, axis=-1, keepdims=True)         # avg_pool2d over full (H, W)
    o_ref[...] = jnp.exp(jnp.log(m) * inv_p).astype(o_ref.dtype)   # m ** (1/p)


def gem_kernel_static_p(x_ref, o_ref, *, eps, p_int):
    # Fast path for static integer p: no per-element EUP log/exp, VPU only.
    x = jnp.maximum(x_ref[...].astype(jnp.float32), eps)
    acc = x
    for _ in range(p_int - 1):
        acc = acc * x
    m = jnp.mean(acc, axis=-1, keepdims=True)
    o_ref[...] = jnp.exp(jnp.log(m) * (1.0 / p_int)).astype(o_ref.dtype)


def _round_up(v, m):
    return ((v + m - 1) // m) * m


def _pick_row_tile(nc, hw, itemsize, target_block_bytes=2 << 20, min_grid=4):
    """Largest row tile (multiple of dtype min-sublane) with block <= ~2 MiB,
    capped so the grid keeps >= ~min_grid steps when NC is large enough."""
    min_sub = {4: 8, 2: 16, 1: 32}.get(itemsize, 8)
    bytes_per_row = max(1, hw * itemsize)
    rt = max(min_sub, (target_block_bytes // bytes_per_row) // min_sub * min_sub)
    rt = min(rt, max(min_sub, _round_up(pl.cdiv(nc, min_grid), min_sub)))
    rt = min(rt, _round_up(nc, min_sub))
    return int(rt)


def gem_pallas(x, p, eps=1e-6, row_tile=None):
    """x: (N, C, H, W); p: scalar parameter (array) or a static Python number."""
    N, C, H, W = x.shape
    NC, HW = N * C, H * W

    x2 = x.reshape(NC, HW)                 # no pad, no dtype cast (native-dtype DMA)
    itemsize = jnp.dtype(x2.dtype).itemsize
    if row_tile is None:
        row_tile = _pick_row_tile(NC, HW, itemsize)

    grid = (pl.cdiv(NC, row_tile),)
    x_spec = pl.BlockSpec((row_tile, HW), lambda i: (i, 0))
    out_spec = pl.BlockSpec((row_tile, 1), lambda i: (i, 0))
    out_shape = jax.ShapeDtypeStruct((NC, 1), x.dtype)
    cparams = pltpu.CompilerParams(dimension_semantics=("parallel",))

    # Static integer-p fast path (e.g. the default init p=3): VPU pow, no EUP.
    p_static = None
    if isinstance(p, (int, float)) and float(p) == int(p) and 1 <= int(p) <= 8:
        p_static = int(p)

    if p_static is not None:
        out = pl.pallas_call(
            functools.partial(gem_kernel_static_p, eps=eps, p_int=p_static),
            out_shape=out_shape,
            grid=grid,
            in_specs=[x_spec],
            out_specs=out_spec,
            compiler_params=cparams,
        )(x2)
    else:
        p_arr = jnp.reshape(p, (1, 1)).astype(jnp.float32)
        out = pl.pallas_call(
            functools.partial(gem_kernel, eps=eps),
            out_shape=out_shape,
            grid=grid,
            in_specs=[
                pl.BlockSpec(memory_space=pltpu.SMEM),   # p (scalar)
                x_spec,                                  # x tile
            ],
            out_specs=out_spec,
            compiler_params=cparams,
        )(p_arr, x2)

    return out.reshape(N, C, 1, 1)


def gem_reference(x, p, eps=1e-6):
    xc = jnp.maximum(x, eps)
    m = jnp.mean(xc ** p, axis=(-2, -1), keepdims=True)
    return m ** (1.0 / p)


if __name__ == "__main__":
    key = jax.random.PRNGKey(0)
    N, C, H, W = 2, 4, 16, 16
    x = jax.random.uniform(key, (N, C, H, W), dtype=jnp.float32)

    # GeM.__init__: self.p = Parameter(torch.ones(1) * 3)  -> deterministic init
    p_param = jnp.ones((1,), dtype=jnp.float32) * 3.0
    eps = 1e-6

    ref = gem_reference(x, p_param[0], eps=eps)

    # General (learnable-p) path: p passed as an SMEM scalar.
    out = gem_pallas(x, p_param, eps=eps)
    out = jax.block_until_ready(out)
    assert out.shape == (N, C, 1, 1), out.shape
    assert jnp.allclose(out, ref, atol=1e-5, rtol=1e-5), (
        float(jnp.max(jnp.abs(out - ref))))

    # Static integer-p fast path (VPU pow, no per-element EUP exp/log).
    out_fast = gem_pallas(x, 3, eps=eps)
    out_fast = jax.block_until_ready(out_fast)
    assert jnp.allclose(out_fast, ref, atol=1e-5, rtol=1e-5), (
        float(jnp.max(jnp.abs(out_fast - ref))))

    print("KERNEL_OK")
</pallas_src>

<mosaic_0001>
module attributes {stable_mosaic.version = 11 : i64} {
  func.func @gem_kernel(%arg0: i32, %arg1: memref<1x1xf32, #tpu.memory_space<smem>>, %arg2: memref<8x256xf32, #tpu.memory_space<vmem>>, %arg3: memref<8x1xf32, #tpu.memory_space<vmem>>) attributes {dimension_semantics = [#tpu.dimension_semantics<parallel>], iteration_bounds = array<i64: 1>, scalar_prefetch = 0 : i64, scratch_operands = 0 : i64, tpu.core_type = #tpu.core_type<tc>, window_params = [{transform_indices = @transform_0, window_bounds = array<i64: 1, 1>}, {transform_indices = @transform_1, window_bounds = array<i64: 8, 256>}, {transform_indices = @transform_2, window_bounds = array<i64: 8, 1>}]} {
    %c0 = arith.constant 0 : index
    %c0_0 = arith.constant 0 : index
    %0 = memref.load %arg1[%c0, %c0_0] : memref<1x1xf32, #tpu.memory_space<smem>>
    %cst = arith.constant 1.000000e+00 : f32
    %1 = arith.divf %cst, %0 : f32
    %c0_1 = arith.constant 0 : index
    %c0_2 = arith.constant 0 : index
    %2 = vector.load %arg2[%c0_1, %c0_2] : memref<8x256xf32, #tpu.memory_space<vmem>>, vector<8x256xf32>
    %cst_3 = arith.constant 9.99999997E-7 : f32
    %3 = vector.broadcast %cst_3 : f32 to vector<8x256xf32>
    %4 = arith.maximumf %2, %3 : vector<8x256xf32>
    %5 = math.log %4 : vector<8x256xf32>
    %6 = vector.broadcast %0 : f32 to vector<8x256xf32>
    %7 = arith.mulf %6, %5 : vector<8x256xf32>
    %8 = math.exp %7 : vector<8x256xf32>
    %cst_4 = arith.constant dense<0.000000e+00> : vector<8xf32>
    %9 = vector.multi_reduction <add>, %8, %cst_4 [1] : vector<8x256xf32> to vector<8xf32>
    %10 = vector.shape_cast %9 : vector<8xf32> to vector<8x1xf32>
    %cst_5 = arith.constant 2.560000e+02 : f32
    %11 = vector.broadcast %cst_5 : f32 to vector<8x1xf32>
    %12 = arith.divf %10, %11 : vector<8x1xf32>
    %13 = math.log %12 : vector<8x1xf32>
    %14 = vector.broadcast %1 : f32 to vector<8x1xf32>
    %15 = arith.mulf %13, %14 : vector<8x1xf32>
    %16 = math.exp %15 : vector<8x1xf32>
    %c0_6 = arith.constant 0 : index
    %c0_7 = arith.constant 0 : index
    %17 = vector.load %arg3[%c0_6, %c0_7] : memref<8x1xf32, #tpu.memory_space<vmem>>, vector<8x1xf32>
    tpu.vector_store %arg3[%c0_6, %c0_7], %16 {strides = array<i32>} : memref<8x1xf32, #tpu.memory_space<vmem>>, vector<8x1xf32>,
    return
  }
  func.func @transform_0(%arg0: i32) -> (i32, i32) {
    %c0_i32 = arith.constant 0 : i32
    %c0_i32_0 = arith.constant 0 : i32
    %c0_i32_1 = arith.constant 0 : i32
    return %c0_i32, %c0_i32_0 : i32, i32
  }
  func.func @transform_1(%arg0: i32) -> (i32, i32) {
    %c0_i32 = arith.constant 0 : i32
    %c0_i32_0 = arith.constant 0 : i32
    return %arg0, %c0_i32 : i32, i32
  }
  func.func @transform_2(%arg0: i32) -> (i32, i32) {
    %c0_i32 = arith.constant 0 : i32
    %c0_i32_0 = arith.constant 0 : i32
    return %arg0, %c0_i32 : i32, i32
  }
}

</mosaic_0001>

<bundles_post_ra>
// kernel: tpu_custom_call.1
= control target key start
LH: loop header
LB: loop body
LE: loop exit
PB: predicated region body
PF: predicated region fallthrough
CT: control target
= control target key end

     0   :  { %8 = vsyncpa [#allocation4], 0  ;;  %s128_s12 = smov [#allocation3]   ;;  %s154_s0 = inlined_call_operand.<no memory space> [shape: f32[1,1], index: 0, kind: input, shape index: {}]   ;;  %s155_s1 = inlined_call_operand.hbm [shape: f32[8,256], index: 1, kind: input, shape index: {}]   ;;  %s156_s2 = inlined_call_operand.vmem [shape: f32[8,1], index: 2, kind: output, shape index: {}]  }
   0x1   :  { %s16_s11 = sshll.u32 %s155_s1, 4  ;;  %s18_s13 = sshll.u32 %s128_s12, 4  ;;  %s17_s11 = int_to_ptr.hbm [resolvable:$true] %s16_s11  ;;  %s19_s13 = int_to_ptr.vmem [resolvable:$true] %s18_s13 }
   0x2   :  { %21 = dma.hbm_to_vmem [thread:$0]  %s17_s11, 256, %s19_s13, [#allocation4]  }
   0x3   :  { %126 = dma.done.wait [#allocation4], 256  }
   0x4   :  { %127 = vsyncadd [#allocation4], 4294967040  ;;  %v27_v0 = vstv %s154_s0  ;;  %v43_v2 = vld [vmem:[#allocation3] sm:$0xff]  ;;  %v44_v3 = vld [vmem:[#allocation3 + $0x8] sm:$0xff]  ;;  %v129_v26 = vmov 256.0   ;;  %vm75_vm5 = vcmask 7168  }
   0x5   :  { %86 = vrcp.f32 %v27_v0  ;;  %v45_v4 = vmax.f32 %v43_v2, 1e-06  ;;  %v46_v5 = vmax.f32 %v44_v3, 1e-06  ;;  %vm33_vm0 = vweird.f32 %v27_v0 }
   0x6   :  { %v39_v7 = vand.u32 2147483648, %v27_v0  ;;  %v37_v9 = vand.u32 2147483647, %v27_v0 }
   0x7   :  { %88 = vlog2.f32 %v45_v4 }
   0x8   :  { %90 = vlog2.f32 %v46_v5  ;;  %v40_v11 = vor.u32 1.1754944e-38, %v39_v7  ;;  %vm38_vm3 = vcmp.eq.f32.partialorder %v37_v9, 8.507059e+37 }
   0xb   :  { %v87_v1 = vpop.eup %86 }
   0xc   :  { %v29_v6 = vmul.f32 %v87_v1, %v27_v0  ;;  %vm34_vm1 = vweird.f32 %v87_v1 }
   0xd   :  { %vm35_vm2 = vmor %vm33_vm0, %vm34_vm1  ;;  %v89_v13 = vpop.eup %88 }
   0xe   :  { %v30_v8 = vsub.f32 1.0, %v29_v6  ;;  %v91_v15 = vpop.eup %90  ;;  %v48_v16 = vmul.f32 0.6931472, %v89_v13 }
   0xf   :  { %v50_v18 = vmul.f32 0.6931472, %v91_v15 }
  0x10   :  { %v31_v10 = vmul.f32 %v87_v1, %v30_v8  ;;  %v52_v19 = vmul.f32 %v48_v16, %v27_v0 }
  0x11   :  { %v53_v20 = vmul.f32 %v50_v18, %v27_v0 }
  0x12   :  { %v32_v12 = vadd.f32 %v87_v1, %v31_v10  ;;  %v54_v21 = vmul.f32 1.442695, %v52_v19 }
  0x13   :  { %v56_v22 = vmul.f32 1.442695, %v53_v20 }
  0x14   :  { %v36_v14 = vsel %vm35_vm2, %v87_v1, %v32_v12  ;;  %92 = vpow2.f32 %v54_v21 }
  0x15   :  { %v41_v17 = vsel %vm38_vm3, %v40_v11, %v36_v14  ;;  %94 = vpow2.f32 %v56_v22 }
  0x16   :  { %82 = vpush %v41_v17  ;;  %96 = vrcp.f32 %v129_v26 }
  0x1a   :  { %v93_v23 = vpop.eup %92 }
  0x1b   :  { %v95_v24 = vpop.eup %94 }
  0x1c   :  { %v58_v25 = vadd.f32 %v95_v24, %v93_v23  ;;  %v97_v27 = vpop.eup %96 }
  0x1d   :  { %v62_v28 = vmul.f32 256.0, %v97_v27  ;;  %vm66_vm4 = vweird.f32 %v97_v27 }
  0x1e   :  { %59 = vadd.xlane.f32.xlu0 %v58_v25 }
  0x1f   :  { %v63_v29 = vsub.f32 1.0, %v62_v28 }
  0x21   :  { %v64_v30 = vmul.f32 %v97_v27, %v63_v29 }
  0x23   :  { %v65_v31 = vadd.f32 %v97_v27, %v64_v30 }
  0x25   :  { %v67_v32 = vsel %vm66_vm4, %v97_v27, %v65_v31 }
  0x47   :  { %s83_s0 = spop %82 }
  0x48   :  { %v71_v36 = vstv %s83_s0 }
  0x91   :  { %v60_v33 = vpop.xlane.xlu0 %59 }
  0x92   :  { %v68_v34 = vmul.f32 %v67_v32, %v60_v33 }
  0x94   :  { %98 = vlog2.f32 %v68_v34 }
  0x9a   :  { %v99_v35 = vpop.eup %98 }
  0x9b   :  { %v70_v37 = vmul.f32 0.6931472, %v99_v35 }
  0x9d   :  { %v72_v38 = vmul.f32 %v71_v36, %v70_v37 }
  0x9f   :  { %v73_v39 = vmul.f32 1.442695, %v72_v38 }
  0xa1   :  { %100 = vpow2.f32 %v73_v39 }
  0xa7   :  { %v101_v40 = vpop.eup %100 }
  0xa8   :  { %76 = vst.msk [vmem:[%s156_s2] sm:$0xff] %vm75_vm5, %v101_v40 }
  0xa9   :  { %81 = vsyncpa [#allocation4], 1 }

</bundles_post_ra>
